<compile_context>
chip_gen: v7x
topology: tpu7x:2x2x1
jax: 0.10.0
libtpu: 0.0.40
codegen_flags: <defaults>
</compile_context>

<pallas_src>
import functools

import jax
import jax.numpy as jnp
from jax.experimental import pallas as pl
from jax.experimental.pallas import tpu as pltpu


def _dcp_kernel(x_ref, w_ref, b_ref, out_ref, *, C, H, W):
    HW = H * W
    x = x_ref[0]                                           # (C, HW) f32

    # Lane-position indices for 'same'-padding edge masks.  Power-of-two W uses
    # a bitwise AND instead of an integer mod (cheaper on the VPU).
    pos = jax.lax.broadcasted_iota(jnp.int32, (C, HW), 1)
    if (W & (W - 1)) == 0:
        col = pos & (W - 1)
    else:
        col = pos % W

    # Shifted views of x via lane rotation (np.roll convention: out[i] = x[i-shift]),
    # with wrapped / out-of-image positions zeroed (== zero padding of the conv).
    xl = jnp.where(col > 0,       pltpu.roll(x, 1,      axis=1), 0.0)  # x at w-1
    xr = jnp.where(col < W - 1,   pltpu.roll(x, HW - 1, axis=1), 0.0)  # x at w+1
    xu = jnp.where(pos >= W,      pltpu.roll(x, W,      axis=1), 0.0)  # x at h-1
    xd = jnp.where(pos < HW - W,  pltpu.roll(x, HW - W, axis=1), 0.0)  # x at h+1

    # 5 folded (C,C)@(C,HW) matmuls (center tap merges the 1x1 shortcut + both
    # directional center taps + both BN scalings); single fused bias.
    y = jnp.dot(w_ref[0], x, preferred_element_type=jnp.float32)
    y = y + jnp.dot(w_ref[1], xl, preferred_element_type=jnp.float32)
    y = y + jnp.dot(w_ref[2], xr, preferred_element_type=jnp.float32)
    y = y + jnp.dot(w_ref[3], xu, preferred_element_type=jnp.float32)
    y = y + jnp.dot(w_ref[4], xd, preferred_element_type=jnp.float32)
    y = y + b_ref[...]                                     # (C,1) broadcast over lanes

    # ELU(alpha=1); exp goes to the EUP (separate bundle slot).
    out_ref[0] = jnp.where(y > 0, y, jnp.exp(y) - 1.0)


def directional_conv_path(x_nchw, p):
    N, C, H, W = x_nchw.shape
    HW = H * W

    # ---- trace-time algebraic folding (tiny (C,C) ops, done once outside) ----
    oscale, sscale = p['oscale'], p['sscale']              # (1, C) each
    # Per-tap effective matrices, shaped (Cout, Cin) for y = W @ x.
    w_center = ((p['wh'][1] + p['wv'][1] + p['w1'] * sscale) * oscale).T
    w_left   = (p['wh'][0] * oscale).T                     # uses x at w-1
    w_right  = (p['wh'][2] * oscale).T                     # uses x at w+1
    w_up     = (p['wv'][0] * oscale).T                     # uses x at h-1
    w_down   = (p['wv'][2] * oscale).T                     # uses x at h+1
    w_all = jnp.stack([w_center, w_left, w_right, w_up, w_down], axis=0)  # (5,C,C)
    bias = (oscale * (p['bh'] + p['bv'] + sscale * p['b1'] + p['sshift'])
            + p['oshift']).reshape(C, 1)                   # (C, 1)

    # Free reshape: NCHW -> (N, C, H*W); spatial goes to lanes.
    x2 = x_nchw.reshape(N, C, HW)

    kern = functools.partial(_dcp_kernel, C=C, H=H, W=W)
    out = pl.pallas_call(
        kern,
        out_shape=jax.ShapeDtypeStruct((N, C, HW), jnp.float32),
        grid=(N,),
        in_specs=[
            pl.BlockSpec((1, C, HW), lambda n: (n, 0, 0)),   # x (per batch)
            pl.BlockSpec((5, C, C), lambda n: (0, 0, 0)),    # folded tap weights (resident)
            pl.BlockSpec((C, 1), lambda n: (0, 0)),          # folded bias (resident)
        ],
        out_specs=pl.BlockSpec((1, C, HW), lambda n: (n, 0, 0)),
        compiler_params=pltpu.CompilerParams(dimension_semantics=("parallel",)),
    )(x2, w_all, bias)

    return out.reshape(N, C, H, W)                           # free reshape back


def init_params(key, C, eps=1e-5):
    ks = jax.random.split(key, 14)
    p = {
        'w1': 0.2 * jax.random.normal(ks[0], (C, C), jnp.float32),     # (Cin, Cout)
        'b1': 0.05 * jax.random.normal(ks[1], (1, C), jnp.float32),
        'wh': 0.2 * jax.random.normal(ks[2], (3, C, C), jnp.float32),  # (tap, Cin, Cout)
        'bh': 0.05 * jax.random.normal(ks[3], (1, C), jnp.float32),
        'wv': 0.2 * jax.random.normal(ks[4], (3, C, C), jnp.float32),
        'bv': 0.05 * jax.random.normal(ks[5], (1, C), jnp.float32),
    }

    def bn_fold(kg, kb, km, kv):
        gamma = 1.0 + 0.1 * jax.random.normal(kg, (1, C), jnp.float32)
        beta = 0.1 * jax.random.normal(kb, (1, C), jnp.float32)
        mean = 0.1 * jax.random.normal(km, (1, C), jnp.float32)
        var = jnp.abs(1.0 + 0.1 * jax.random.normal(kv, (1, C), jnp.float32))
        scale = gamma * jax.lax.rsqrt(var + eps)
        return scale, beta - mean * scale

    p['sscale'], p['sshift'] = bn_fold(ks[6], ks[7], ks[8], ks[9])
    p['oscale'], p['oshift'] = bn_fold(ks[10], ks[11], ks[12], ks[13])
    return p


def reference(x_nchw, p):
    """Pure-JAX reference (NCHW, lax convs) for correctness check."""
    def conv(x, w, b, ph, pw):
        y = jax.lax.conv_general_dilated(
            x, w, (1, 1), ((ph, ph), (pw, pw)),
            dimension_numbers=('NCHW', 'OIHW', 'NCHW'))
        return y + b.reshape(1, -1, 1, 1)

    def bn(y, scale, shift):
        return y * scale.reshape(1, -1, 1, 1) + shift.reshape(1, -1, 1, 1)

    w1 = jnp.transpose(p['w1'])[:, :, None, None]              # (O, I, 1, 1)
    wh = jnp.transpose(p['wh'], (2, 1, 0))[:, :, None, :]      # (O, I, 1, 3)
    wv = jnp.transpose(p['wv'], (2, 1, 0))[:, :, :, None]      # (O, I, 3, 1)

    s = bn(conv(x_nchw, w1, p['b1'], 0, 0), p['sscale'], p['sshift'])
    d = conv(x_nchw, wh, p['bh'], 0, 1) + conv(x_nchw, wv, p['bv'], 1, 0)
    y = bn(d + s, p['oscale'], p['oshift'])
    return jnp.where(y > 0, y, jnp.exp(y) - 1.0)


if __name__ == "__main__":
    key = jax.random.PRNGKey(0)
    kx, kp = jax.random.split(key)

    N, C, H, W = 2, 4, 16, 16
    x = jax.random.normal(kx, (N, C, H, W), jnp.float32)
    params = init_params(kp, C)

    out = directional_conv_path(x, params)
    out = jax.block_until_ready(out)

    ref = reference(x, params)
    assert out.shape == (N, C, H, W), out.shape
    max_err = float(jnp.max(jnp.abs(out - ref)))
    assert jnp.allclose(out, ref, atol=1e-3, rtol=1e-3), f"max abs err {max_err}"

    print("KERNEL_OK")
</pallas_src>

<mosaic_0001>
module attributes {stable_mosaic.version = 11 : i64} {
  func.func @_dcp_kernel(%arg0: i32, %arg1: memref<1x4x256xf32, #tpu.memory_space<vmem>>, %arg2: memref<5x4x4xf32, #tpu.memory_space<vmem>>, %arg3: memref<4x1xf32, #tpu.memory_space<vmem>>, %arg4: memref<1x4x256xf32, #tpu.memory_space<vmem>>) attributes {dimension_semantics = [#tpu.dimension_semantics<parallel>], iteration_bounds = array<i64: 2>, scalar_prefetch = 0 : i64, scratch_operands = 0 : i64, tpu.core_type = #tpu.core_type<tc>, window_params = [{transform_indices = @transform_0, window_bounds = array<i64: 1, 4, 256>}, {pipeline_mode = #tpu.pipeline_mode<synchronous>, transform_indices = @transform_1, window_bounds = array<i64: 5, 4, 4>}, {pipeline_mode = #tpu.pipeline_mode<synchronous>, transform_indices = @transform_2, window_bounds = array<i64: 4, 1>}, {transform_indices = @transform_3, window_bounds = array<i64: 1, 4, 256>}]} {
    %c0 = arith.constant 0 : index
    %c0_0 = arith.constant 0 : index
    %c0_1 = arith.constant 0 : index
    %0 = vector.load %arg1[%c0, %c0_0, %c0_1] : memref<1x4x256xf32, #tpu.memory_space<vmem>>, vector<1x4x256xf32>
    %1 = vector.shape_cast %0 : vector<1x4x256xf32> to vector<4x256xf32>
    %2 = tpu.iota {dimensions = array<i32: 1>} : vector<4x256xi32>
    %c15_i32 = arith.constant 15 : i32
    %3 = vector.broadcast %c15_i32 : i32 to vector<4x256xi32>
    %4 = arith.andi %2, %3 : vector<4x256xi32>
    %c0_i32 = arith.constant 0 : i32
    %5 = vector.broadcast %c0_i32 : i32 to vector<4x256xi32>
    %6 = arith.cmpi sgt, %4, %5 : vector<4x256xi32>
    %c1_i32 = arith.constant 1 : i32
    %7 = tpu.dynamic_rotate %1 by %c1_i32 dim 1 : vector<4x256xf32>, i32 -> vector<4x256xf32>
    %cst = arith.constant 0.000000e+00 : f32
    %8 = vector.broadcast %cst : f32 to vector<4x256xf32>
    %9 = arith.select %6, %7, %8 : vector<4x256xi1>, vector<4x256xf32>
    %c15_i32_2 = arith.constant 15 : i32
    %10 = vector.broadcast %c15_i32_2 : i32 to vector<4x256xi32>
    %11 = arith.cmpi slt, %4, %10 : vector<4x256xi32>
    %c255_i32 = arith.constant 255 : i32
    %12 = tpu.dynamic_rotate %1 by %c255_i32 dim 1 : vector<4x256xf32>, i32 -> vector<4x256xf32>
    %cst_3 = arith.constant 0.000000e+00 : f32
    %13 = vector.broadcast %cst_3 : f32 to vector<4x256xf32>
    %14 = arith.select %11, %12, %13 : vector<4x256xi1>, vector<4x256xf32>
    %c16_i32 = arith.constant 16 : i32
    %15 = vector.broadcast %c16_i32 : i32 to vector<4x256xi32>
    %16 = arith.cmpi sge, %2, %15 : vector<4x256xi32>
    %c16_i32_4 = arith.constant 16 : i32
    %17 = tpu.dynamic_rotate %1 by %c16_i32_4 dim 1 : vector<4x256xf32>, i32 -> vector<4x256xf32>
    %cst_5 = arith.constant 0.000000e+00 : f32
    %18 = vector.broadcast %cst_5 : f32 to vector<4x256xf32>
    %19 = arith.select %16, %17, %18 : vector<4x256xi1>, vector<4x256xf32>
    %c240_i32 = arith.constant 240 : i32
    %20 = vector.broadcast %c240_i32 : i32 to vector<4x256xi32>
    %21 = arith.cmpi slt, %2, %20 : vector<4x256xi32>
    %c240_i32_6 = arith.constant 240 : i32
    %22 = tpu.dynamic_rotate %1 by %c240_i32_6 dim 1 : vector<4x256xf32>, i32 -> vector<4x256xf32>
    %cst_7 = arith.constant 0.000000e+00 : f32
    %23 = vector.broadcast %cst_7 : f32 to vector<4x256xf32>
    %24 = arith.select %21, %22, %23 : vector<4x256xi1>, vector<4x256xf32>
    %c0_8 = arith.constant 0 : index
    %c0_9 = arith.constant 0 : index
    %c0_10 = arith.constant 0 : index
    %25 = vector.load %arg2[%c0_8, %c0_9, %c0_10] : memref<5x4x4xf32, #tpu.memory_space<vmem>>, vector<1x4x4xf32>
    %26 = vector.shape_cast %25 : vector<1x4x4xf32> to vector<4x4xf32>
    %cst_11 = arith.constant dense<0.000000e+00> : vector<4x256xf32>
    %27 = tpu.matmul %26, %1, %cst_11 {dimension_numbers = #tpu.dot_dimension_numbers<[1], [0], [0], [1], [0, 0, 1, 1], [], []>} : vector<4x4xf32>, vector<4x256xf32>, vector<4x256xf32> -> vector<4x256xf32>
    %c1 = arith.constant 1 : index
    %c0_12 = arith.constant 0 : index
    %c0_13 = arith.constant 0 : index
    %28 = vector.load %arg2[%c1, %c0_12, %c0_13] : memref<5x4x4xf32, #tpu.memory_space<vmem>>, vector<1x4x4xf32>
    %29 = vector.shape_cast %28 : vector<1x4x4xf32> to vector<4x4xf32>
    %cst_14 = arith.constant dense<0.000000e+00> : vector<4x256xf32>
    %30 = tpu.matmul %29, %9, %cst_14 {dimension_numbers = #tpu.dot_dimension_numbers<[1], [0], [0], [1], [0, 0, 1, 1], [], []>} : vector<4x4xf32>, vector<4x256xf32>, vector<4x256xf32> -> vector<4x256xf32>
    %31 = arith.addf %27, %30 : vector<4x256xf32>
    %c2 = arith.constant 2 : index
    %c0_15 = arith.constant 0 : index
    %c0_16 = arith.constant 0 : index
    %32 = vector.load %arg2[%c2, %c0_15, %c0_16] : memref<5x4x4xf32, #tpu.memory_space<vmem>>, vector<1x4x4xf32>
    %33 = vector.shape_cast %32 : vector<1x4x4xf32> to vector<4x4xf32>
    %cst_17 = arith.constant dense<0.000000e+00> : vector<4x256xf32>
    %34 = tpu.matmul %33, %14, %cst_17 {dimension_numbers = #tpu.dot_dimension_numbers<[1], [0], [0], [1], [0, 0, 1, 1], [], []>} : vector<4x4xf32>, vector<4x256xf32>, vector<4x256xf32> -> vector<4x256xf32>
    %35 = arith.addf %31, %34 : vector<4x256xf32>
    %c3 = arith.constant 3 : index
    %c0_18 = arith.constant 0 : index
    %c0_19 = arith.constant 0 : index
    %36 = vector.load %arg2[%c3, %c0_18, %c0_19] : memref<5x4x4xf32, #tpu.memory_space<vmem>>, vector<1x4x4xf32>
    %37 = vector.shape_cast %36 : vector<1x4x4xf32> to vector<4x4xf32>
    %cst_20 = arith.constant dense<0.000000e+00> : vector<4x256xf32>
    %38 = tpu.matmul %37, %19, %cst_20 {dimension_numbers = #tpu.dot_dimension_numbers<[1], [0], [0], [1], [0, 0, 1, 1], [], []>} : vector<4x4xf32>, vector<4x256xf32>, vector<4x256xf32> -> vector<4x256xf32>
    %39 = arith.addf %35, %38 : vector<4x256xf32>
    %c4 = arith.constant 4 : index
    %c0_21 = arith.constant 0 : index
    %c0_22 = arith.constant 0 : index
    %40 = vector.load %arg2[%c4, %c0_21, %c0_22] : memref<5x4x4xf32, #tpu.memory_space<vmem>>, vector<1x4x4xf32>
    %41 = vector.shape_cast %40 : vector<1x4x4xf32> to vector<4x4xf32>
    %cst_23 = arith.constant dense<0.000000e+00> : vector<4x256xf32>
    %42 = tpu.matmul %41, %24, %cst_23 {dimension_numbers = #tpu.dot_dimension_numbers<[1], [0], [0], [1], [0, 0, 1, 1], [], []>} : vector<4x4xf32>, vector<4x256xf32>, vector<4x256xf32> -> vector<4x256xf32>
    %43 = arith.addf %39, %42 : vector<4x256xf32>
    %c0_24 = arith.constant 0 : index
    %c0_25 = arith.constant 0 : index
    %44 = vector.load %arg3[%c0_24, %c0_25] : memref<4x1xf32, #tpu.memory_space<vmem>>, vector<4x1xf32>
    %45 = vector.broadcast %44 : vector<4x1xf32> to vector<4x256xf32>
    %46 = arith.addf %43, %45 : vector<4x256xf32>
    %cst_26 = arith.constant 0.000000e+00 : f32
    %47 = vector.broadcast %cst_26 : f32 to vector<4x256xf32>
    %48 = arith.cmpf ogt, %46, %47 : vector<4x256xf32>
    %49 = math.exp %46 : vector<4x256xf32>
    %cst_27 = arith.constant 1.000000e+00 : f32
    %50 = vector.broadcast %cst_27 : f32 to vector<4x256xf32>
    %51 = arith.subf %49, %50 : vector<4x256xf32>
    %52 = arith.select %48, %46, %51 : vector<4x256xi1>, vector<4x256xf32>
    %c0_28 = arith.constant 0 : index
    %c0_29 = arith.constant 0 : index
    %c0_30 = arith.constant 0 : index
    %53 = vector.load %arg4[%c0_28, %c0_29, %c0_30] : memref<1x4x256xf32, #tpu.memory_space<vmem>>, vector<1x4x256xf32>
    %54 = vector.shape_cast %53 : vector<1x4x256xf32> to vector<4x256xf32>
    %55 = vector.shape_cast %52 : vector<4x256xf32> to vector<1x4x256xf32>
    tpu.vector_store %arg4[%c0_28, %c0_29, %c0_30], %55 {strides = array<i32>} : memref<1x4x256xf32, #tpu.memory_space<vmem>>, vector<1x4x256xf32>,
    return
  }
  func.func @transform_0(%arg0: i32) -> (i32, i32, i32) {
    %c0_i32 = arith.constant 0 : i32
    %c0_i32_0 = arith.constant 0 : i32
    %c0_i32_1 = arith.constant 0 : i32
    return %arg0, %c0_i32, %c0_i32_0 : i32, i32, i32
  }
  func.func @transform_1(%arg0: i32) -> (i32, i32, i32) {
    %c0_i32 = arith.constant 0 : i32
    %c0_i32_0 = arith.constant 0 : i32
    %c0_i32_1 = arith.constant 0 : i32
    %c0_i32_2 = arith.constant 0 : i32
    return %c0_i32, %c0_i32_0, %c0_i32_1 : i32, i32, i32
  }
  func.func @transform_2(%arg0: i32) -> (i32, i32) {
    %c0_i32 = arith.constant 0 : i32
    %c0_i32_0 = arith.constant 0 : i32
    %c0_i32_1 = arith.constant 0 : i32
    return %c0_i32, %c0_i32_0 : i32, i32
  }
  func.func @transform_3(%arg0: i32) -> (i32, i32, i32) {
    %c0_i32 = arith.constant 0 : i32
    %c0_i32_0 = arith.constant 0 : i32
    %c0_i32_1 = arith.constant 0 : i32
    return %arg0, %c0_i32, %c0_i32_0 : i32, i32, i32
  }
}

</mosaic_0001>

<bundles_post_ra>
// kernel: tpu_custom_call.1
= control target key start
LH: loop header
LB: loop body
LE: loop exit
PB: predicated region body
PF: predicated region fallthrough
CT: control target
= control target key end

     0   :  { %8 = vsyncpa [#allocation3], 0  ;;  %s1092_s0 = inlined_call_operand.vmem [shape: f32[2,4,256], index: 0, kind: input, shape index: {}]   ;;  %s1093_s1 = inlined_call_operand.vmem [shape: f32[5,4,4], index: 1, kind: input, shape index: {}]   ;;  %s1094_s2 = inlined_call_operand.vmem [shape: f32[4,1], index: 2, kind: input, shape index: {}]   ;;  %s1095_s3 = inlined_call_operand.hbm [shape: f32[2,4,256], index: 3, kind: output, shape index: {}]  }
   0x1   :  { %10 = vsyncpa [#allocation3 + $0x1], 0  ;;  %s919_s12 = smov 0   ;;  %s921_s13 = smov 0  }
   0x2   :  { %s923_s14 = smov 0   ;;  %s925_s15 = smov 0  }
   0x3 LB: > { %s940_s16 = sadd.s32 4294967295, %s890_s15   ;;  %s734_s17 = sadd.s32 4294967294, %s890_s15   ;;  %s890_s15 = sphi %s925_s15, %s1109_s15   ;;  %s886_s14 = sphi %s923_s14, %s1108_s14   ;;  %s882_s13 = sphi %s921_s13, %s1107_s13   ;;  %s878_s12 = sphi %s919_s12, %s1106_s12  }
   0x4   : > { %s944_s18 = sadd.s32 1, %s890_s15   ;;  %s91_s19 = sadd.s32 1, %s886_s14 }
   0x5   : > { %s88_s20 = ssub.s32 %s890_s15, %s944_s18  ;;  %p101_p0 = scmp.ne.s32.totalorder %s886_s14, %s882_s13 }
   0x6   : > { %p89_p1 = scmp.eq.s32.totalorder %s88_s20, 0  ;;  %p102_p2 = scmp.eq.s32.totalorder %s940_s16, 1 }
   0x7   : > { %p107_p3 = scmp.ne.s32.totalorder %s882_s13, %s878_s12  ;;  %p108_p4 = scmp.eq.s32.totalorder %s734_s17, 1 }
   0x8   : > { %s955_s21 = scalar_select %p89_p1, %s886_s14, %s91_s19  }
   0x9   : > { %p957_p5 = por %p102_p2, %p101_p0  ;;  %p961_p6 = por %p108_p4, %p107_p3 }
   0xa   : > { %p737_p7 = scmp.ge.s32.totalorder %s890_s15, 1  ;;  %p140_p8 = scmp.lt.s32.totalorder %s890_s15, 3 }
   0xc   : > { %p141_p9 = pnand %p737_p7, %p140_p8 }
   0xd   : > { %p164_p10 = scmp.lt.s32.totalorder (!%p141_p9), %s940_s16, 1  ;;  %v892_v0 = vmov (!%p141_p9), 0.0   ;;  %s893_s29 = smov (!%p141_p9), 1   ;;  %v897_v3 = vmov (!%p141_p9), 0   ;;  %v637_v4 = vld [vmem:[%s1094_s2] sm:$0xf] (!%p141_p9)  ;;  %v170_v5 = vlaneseq (!%p141_p9) }
   0xe   : > { %144 = sbr.rel (%p141_p9) target bundleno = 414 (0x19e), region = 32  ;;  %460 = vmatprep.mubr.f32.mxu0 (!%p141_p9), %v892_v0  ;;  %300 = vmatprep.mubr.f32.mxu1 (!%p141_p9), %v892_v0  ;;  %s894_s30 = smov (!%p141_p9), 127   ;;  %vm229_vm6 = vcmask (!%p141_p9), 1043456   ;;  %vm225_vm8 = vcmask (!%p141_p9), 31744   ;;  %v748_v22 = vld [vmem:[%s1093_s1 + $0x8] sm:$0xf] (!%p141_p9) }
   0xf   : > { %s895_s4 = smov (!%p141_p9), 16   ;;  %s896_s5 = smov (!%p141_p9), 112   ;;  %822 = vset.pattern.permute.xlu0 (!%p141_p9), %v897_v3  ;;  %v171_v6 = vand.u32 (!%p141_p9), 127, %v170_v5  ;;  %v741_v27 = vld [vmem:[%s1093_s1 + $0x4] sm:$0xf] (!%p141_p9) }
  0x10   : > { %v752_v37 = vld [vmem:[%s1093_s1 + $0xc] sm:$0xf] (!%p141_p9)  ;;  %v222_v38 = vld [vmem:[%s1093_s1] sm:$0xf] (!%p141_p9)  ;;  %v756_v40 = vld [vmem:[%s1093_s1 + $0x10] sm:$0xf] (!%p141_p9) }
  0x11   : > { %v172_v7 = vadd.s32 (!%p141_p9), 128, %v171_v6  ;;  %v173_v9 = vand.u32 (!%p141_p9), 15, %v171_v6  ;;  %vm184_vm0 = vcmp.lt.s32.totalorder (!%p141_p9), %v171_v6, 1  ;;  %vm195_vm1 = vcmp.lt.s32.totalorder (!%p141_p9), %v171_v6, 127  ;;  %s161_s27 = sand.u32 (!%p141_p9), 1, %s882_s13  }
  0x12   : > { %vm206_vm7 = vcmp.lt.s32.totalorder (!%p141_p9), %v171_v6, 16  ;;  %vm200_vm9 = vcmp.ge.s32.totalorder (!%p141_p9), %v171_v6, 16  ;;  %vm217_vm10 = vcmp.lt.s32.totalorder (!%p141_p9), %v171_v6, 112  ;;  %s661_s8 = scalar_lea.sflag (!%p141_p9), [#allocation3], %s161_s27 }
  0x13   : > { %v174_v8 = vand.u32 (!%p141_p9), 15, %v172_v7  ;;  %vm993_vm4 = vcmp.gt.s32.totalorder (!%p141_p9), %v173_v9, 0  ;;  %vm997_vm5 = vcmp.lt.s32.totalorder (!%p141_p9), %v173_v9, 15  ;;  %vm212_vm11 = vcmp.lt.s32.totalorder (!%p141_p9), %v172_v7, 240 }
  0x15   : > { %s165_s24 = scalar_select %p164_p10, %s940_s16, 1  ;;  %vm985_vm2 = vcmp.gt.s32.totalorder %v174_v8, 0  ;;  %vm989_vm3 = vcmp.lt.s32.totalorder %v174_v8, 15 }
  0x17   : > { %s767_s25 = sshll.u32 %s165_s24, 3 }
  0x18   : > { %s168_s28 = scalar_lea.vmem %s1092_s0, %s767_s25 }
  0x19   : > { %v974_v1 = vld [vmem:[%s168_s28] sm:$0xff]  ;;  %s738_s28 = sshll.u32 %s161_s27, 3 }
  0x1a   : > { %180 = vrot.lane.b32.xlu1 %v974_v1, %s893_s29  ;;  %191 = vrot.lane.b32.xlu0 %v974_v1, %s894_s30  ;;  %v178_v2 = vcombine.high %v974_v1, %v974_v1 }
  0x1e   : > { %182 = vrot.lane.b32.xlu1 %v178_v2, %s893_s29  ;;  %193 = vrot.lane.b32.xlu0 %v178_v2, %s894_s30  ;;  %s768_s29 = sshll.u32 %s940_s16, 7  ;;  %s163_s30 = scalar_lea.vmem [#allocation2], %s738_s28 }
  0x1f   : > { %s1050_s7 = scalar_lea.hbm %s1095_s3, %s768_s29  ;;  %s898_s16 = smov [#allocation2]  }
  0x20   : > { %s832_s10 = sshll.u32 %s898_s16, 4  ;;  %s833_s10 = int_to_ptr.vmem [resolvable:$false] %s832_s10 }
  0x21   : > { %s834_s11 = scalar_lea.vmem %s833_s10, 256 }
  0x22   : > { %204 = vrot.lane.b32.xlu1 %v178_v2, %s895_s4  ;;  %202 = vrot.lane.b32.xlu0 %v974_v1, %s895_s4  ;;  %s675_s4 = sshll.u32 %s163_s30, 4  ;;  %s1052_s4 = int_to_ptr.vmem [resolvable:$true] %s675_s4 }
  0x23   : > { %s828_s9 = scalar_lea.vmem %s1052_s4, 128  ;;  %p835_p0 = scmp.lt.s32.totalorder %s1052_s4, %s833_s10 }
  0x24   : > { %p829_p11 = scmp.ne.s32.totalorder %s1052_s4, %s828_s9  ;;  %p836_p1 = scmp.lt.s32.totalorder %s834_s11, %s828_s9 }
  0x26   : > { %215 = vrot.lane.b32.xlu1 %v178_v2, %s896_s5  ;;  %213 = vrot.lane.b32.xlu0 %v974_v1, %s896_s5  ;;  %p830_p12 = pnand %p829_p11, %p957_p5  ;;  %p837_p2 = por %p836_p1, %p835_p0 }
  0x28   : > { %p831_p13 = pneg %p830_p12 }
  0x2a   : > { %640 = vperm.xlu0 %822, %v637_v4   ;;  %p838_p3 = pnand %p837_p2, %p831_p13 }
  0x8c   : > { %v181_v10 = vpop.permute.xlu1 %180  ;;  %v192_v11 = vpop.permute.xlu0 %191 }
  0x90   : > { %v183_v16 = vpop.permute.xlu1 %182  ;;  %v194_v17 = vpop.permute.xlu0 %193 }
  0x91   : > { %v186_v18 = vsel %vm184_vm0, %v183_v16, %v181_v10  ;;  %v196_v19 = vsel %vm195_vm1, %v192_v11, %v194_v17  ;;  %v185_v20 = vsel %vm184_vm0, %v181_v10, %v183_v16  ;;  %v197_v21 = vsel %vm195_vm1, %v194_v17, %v192_v11 }
  0x92   : > { %v188_v23 = vsel %vm985_vm2, %v185_v20, 0.0  ;;  %v199_v24 = vsel %vm989_vm3, %v197_v21, 0.0  ;;  %v187_v25 = vsel %vm993_vm4, %v186_v18, 0.0  ;;  %v198_v26 = vsel %vm997_vm5, %v196_v19, 0.0 }
  0x93   : > { %742 = vmatprep.subr.msk.mxu1 %vm229_vm6, %v188_v23  ;;  %749 = vmatprep.subr.msk.mxu0 %vm229_vm6, %v199_v24 }
  0x94   : > { %743 = vmatpush1.msk.msra.mxu1 %vm229_vm6, %v187_v25  ;;  %v205_v28 = vpop.permute.xlu1 %204  ;;  %750 = vmatpush1.msk.msra.mxu0 %vm229_vm6, %v198_v26  ;;  %v203_v29 = vpop.permute.xlu0 %202 }
  0x95   : > { %v207_v30 = vsel %vm206_vm7, %v203_v29, %v205_v28  ;;  %v208_v31 = vsel %vm206_vm7, %v205_v28, %v203_v29  ;;  %751 = vmatmul.mubr.msk.f32.vlgmr.msra.gmra.mrb[0].mxu0 %vm225_vm8, %v748_v22  ;;  %744 = vmatmul.mubr.msk.f32.vlgmr.msra.gmra.mrb[0].mxu1 %vm225_vm8, %v741_v27 }
  0x96   : > { %v209_v32 = vsel %vm200_vm9, %v208_v31, 0.0  ;;  %753 = vmatprep.subr.msk.mxu0 %vm229_vm6, %v207_v30  ;;  %745 = vmatprep.subr.msk.mxu1 %vm229_vm6, %v178_v2 }
  0x97   : > { %754 = vmatpush1.msk.msra.mxu0 %vm229_vm6, %v209_v32  ;;  %544 = vmatprep.mubr.f32.mxu0 %v892_v0 }
  0x98   : > { %v216_v33 = vpop.permute.xlu1 %215  ;;  %v214_v34 = vpop.permute.xlu0 %213  ;;  %746 = vmatpush1.msk.msra.mxu1 %vm229_vm6, %v974_v1  ;;  %378 = vmatprep.mubr.f32.mxu1 %v892_v0 }
  0x99   : > { %v219_v35 = vsel %vm217_vm10, %v216_v33, %v214_v34  ;;  %v218_v39 = vsel %vm217_vm10, %v214_v34, %v216_v33 }
  0x9a   : > { %v221_v36 = vsel %vm212_vm11, %v219_v35, 0.0 }
  0x9b   : > { %757 = vmatprep.subr.msk.mxu0 %vm229_vm6, %v221_v36 }
  0x9d   : > { %755 = vmatmul.mubr.msk.f32.vlgmr.msra.gmra.mrb[0].mxu0 %vm225_vm8, %v752_v37  ;;  %747 = vmatmul.mubr.msk.f32.vlgmr.msra.gmra.mrb[0].mxu1 %vm225_vm8, %v222_v38 }
  0x9e   : > { %758 = vmatpush1.msk.msra.mxu0 %vm229_vm6, %v218_v39  ;;  %628 = vmatprep.mubr.f32.mxu0 %v892_v0 }
  0xa5   : > { %759 = vmatmul.mubr.msk.f32.vlgmr.msra.gmra.mrb[0].mxu0 %vm225_vm8, %v756_v40 }
  0xa9   : > { %v641_v44 = vpop.permute.xlu0 %640 }
 0x170   : > { %v380_v41 = vpop.f32.mrb[0].mxu1 }
 0x171   : > { %v382_v42 = vpop.f32.mrb[1].mxu1 }
 0x178   : > { %v630_v43 = vpop.f32.mrb[0].mxu0 }
 0x179   : > { %v769_v45 = vadd.f32 %v630_v43, %v380_v41  ;;  %v632_v46 = vpop.f32.mrb[1].mxu0 }
 0x17a   : > { %v770_v47 = vadd.f32 %v632_v46, %v382_v42 }
 0x17b   : > { %v643_v48 = vadd.f32 %v769_v45, %v641_v44 }
 0x17c   : > { %v644_v49 = vadd.f32 %v770_v47, %v641_v44 }
 0x17d   : > { %v647_v50 = vmul.f32 1.442695, %v643_v48  ;;  %vm645_vm12 = vcmp.gt.f32.partialorder %v643_v48, 0.0 }
 0x17e   : > { %v649_v51 = vmul.f32 1.442695, %v644_v49  ;;  %vm646_vm13 = vcmp.gt.f32.partialorder %v644_v49, 0.0 }
 0x17f   : > { %824 = vpow2.f32 %v647_v50 }
 0x180   : > { %826 = vpow2.f32 %v649_v51 }
 0x189   : > { %v825_v52 = vpop.eup %824 }
 0x18a   : > { %v827_v53 = vpop.eup %826  ;;  %v760_v54 = vadd.f32 -1.0, %v825_v52 }
 0x18b   : > { %v761_v55 = vadd.f32 -1.0, %v827_v53 }
 0x18c   : > { %v653_v56 = vsel %vm645_vm12, %v643_v48, %v760_v54 }
 0x18d   : > { %v654_v57 = vsel %vm646_vm13, %v644_v49, %v761_v55 }
 0x18e   : > { %v657_v58 = vcombine.low %v653_v56, %v654_v57 }
 0x190   : > { %659 = vst [vmem:[%s163_s30] sm:$0xff] %v657_v58 }
 0x191   : > { %841 = shalt.err (!%p838_p3)
}
 0x192   : > { %s842_s17 = scalar_lea.hbm %s1050_s7, 128  ;;  %s846_s24 = scalar_lea.hbm %s1095_s3, 256 }
 0x193   : > { %p843_p4 = scmp.ne.s32.totalorder %s1050_s7, %s842_s17  ;;  %p847_p9 = scmp.lt.u32.totalorder %s1050_s7, %s1095_s3 }
 0x194   : > { %p848_p10 = scmp.lt.u32.totalorder %s846_s24, %s842_s17  ;;  %p850_p12 = scmp.lt.u32.totalorder %s842_s17, %s1050_s7 }
 0x195   : > { %p844_p7 = pnand %p843_p4, %p957_p5 }
 0x196   : > { %p849_p11 = por %p848_p10, %p847_p9 }
 0x197   : > { %p845_p8 = pneg %p844_p7 }
 0x198   : > { %p851_p13 = por %p850_p12, %p849_p11 }
 0x19a   : > { %p852_p0 = pnand %p851_p13, %p845_p8 }
 0x19c   : > { %855 = shalt.err (!%p852_p0)
}
 0x19d   : > { %777 = dma.vmem_to_hbm [thread:$0]  (%p957_p5), %s1052_s4, 128, %s1050_s7, %s661_s8  }
 0x19e PF: > { %p783_p1 = scmp.ge.s32.totalorder %s890_s15, 2  ;;  %s687_s27 = sand.u32 1, %s878_s12  }
 0x19f   : > { %s688_s28 = scalar_lea.sflag [#allocation3], %s687_s27 }
 0x1a0   : > { %p780_p2 = pnand %p783_p1, %p961_p6 }
 0x1a2   : > { %873 = dma.done.wait (!%p780_p2), %s688_s28, 128  }
 0x1a3   : > { %875 = vsyncadd (!%p780_p2), %s688_s28, 4294967168  ;;  %p13_p3 = scmp.ge.s32.totalorder %s944_s18, 4   ;;  %s1106_s12 = smov %s882_s13 }
 0x1a4   : > { %s1107_s13 = smov %s886_s14  ;;  %s1108_s14 = smov %s955_s21 }
 0x1a5   : > { %s1109_s15 = smov %s944_s18  ;;  %15 = sbr.rel (!%p13_p3) target bundleno = 3 (0x3), region = 71 }
 0x1ac   :  { %693 = vsyncpa [#allocation3], 1 }
 0x1ad   :  { %695 = vsyncpa [#allocation3 + $0x1], 1 }

</bundles_post_ra>
